<compile_context>
chip_gen: v5e
topology: v5e:2x2
jax: 0.10.0
libtpu: 0.0.40
codegen_flags: <defaults>
</compile_context>

<pallas_src>
import functools

import numpy as np
import jax
import jax.numpy as jnp
from jax.experimental import pallas as pl
from jax.experimental.pallas import tpu as pltpu

EPS = 1e-5


# ----------------------------------------------------------------------------- helpers
def _lane_group_allreduce(v, group_size, n_groups):
    """Cyclic sum across lane groups of `v` (shape (1, n_groups*group_size)).

    Every lane ends up holding the total of its residue class (lane % group_size),
    i.e. per-channel sums already broadcast back to all W groups. Uses pltpu.roll (XLU)."""
    if (n_groups & (n_groups - 1)) == 0:           # power of two -> log-depth tree
        shift = group_size
        total = group_size * n_groups
        while shift < total:
            v = v + pltpu.roll(v, shift=shift, axis=1)
            shift *= 2
        return v
    acc = v
    for j in range(1, n_groups):
        acc = acc + pltpu.roll(v, shift=j * group_size, axis=1)
    return acc


def _bn_relu_lane(y, gamma_l, beta_l, n_groups, count):
    """Training-mode BatchNorm2d + ReLU on a lane-dense activation.

    y:       (rows, n_groups*C) float32, lane index = w*C + c
    gamma_l: (1, n_groups*C) float32 (per-channel gamma tiled across the W groups)
    beta_l:  (1, n_groups*C) float32
    count:   number of samples per channel = N*H*W
    """
    group = y.shape[-1] // n_groups
    col_s = jnp.sum(y, axis=0, keepdims=True)            # (1, W*C)
    col_ss = jnp.sum(y * y, axis=0, keepdims=True)       # (1, W*C)  one-pass stats
    s_l = _lane_group_allreduce(col_s, group, n_groups)
    ss_l = _lane_group_allreduce(col_ss, group, n_groups)
    inv = 1.0 / float(count)
    mean_l = s_l * inv
    var_l = jnp.maximum(ss_l * inv - mean_l * mean_l, 0.0)   # biased var, clamp cancellation
    scale_l = gamma_l * jax.lax.rsqrt(var_l + EPS)
    shift_l = beta_l - mean_l * scale_l
    return jnp.maximum(y * scale_l + shift_l, 0.0)


# ------------------------------------------------------------------------------ kernel
def double_conv_kernel(lhs1_ref, m1_ref, bn1_ref, m2_ref, bn2_ref, out_ref, *,
                       n, height, width):
    NH = n * height
    count = NH * width                       # N*H*W samples per channel

    # ---- conv1: one banded matmul, K = 3*W*Cin (vertical taps fused along K) ----
    acc1 = jnp.dot(lhs1_ref[...], m1_ref[...], preferred_element_type=jnp.float32)
    h = _bn_relu_lane(acc1, bn1_ref[0:1, :], bn1_ref[1:2, :], width, count)  # (NH, W*Cmid) f32

    # ---- conv2 LHS: +-1-row shifts via XLU sublane roll + image-boundary mask, ----
    # ---- K-concat along lanes (horizontal taps / W padding live in the weights) ----
    row = jax.lax.broadcasted_iota(jnp.int32, h.shape, 0) % height
    up = jnp.where(row == 0, 0.0, pltpu.roll(h, shift=1, axis=0))            # source row h-1
    down = jnp.where(row == height - 1, 0.0, pltpu.roll(h, shift=NH - 1, axis=0))  # row h+1
    lhs2 = jnp.concatenate([up, h, down], axis=-1).astype(jnp.bfloat16)      # (NH, 3*W*Cmid)

    # ---- conv2: one banded matmul, K = 3*W*Cmid ----
    acc2 = jnp.dot(lhs2, m2_ref[...], preferred_element_type=jnp.float32)
    out_ref[...] = _bn_relu_lane(acc2, bn2_ref[0:1, :], bn2_ref[1:2, :], width, count)


# ----------------------------------------------------------------------------- wrapper
def _banded_weights(w, W):
    """w: (3, 3, Cin, Cout) (di, dj, c, o)  ->  (3*W*Cin, W*Cout) bf16, di-stacked along K.

    M[di*W*Cin + wi*Cin + c, wo*Cout + o] = w[di, dj, c, o] with wi = wo + dj - 1;
    out-of-range wi are dropped, i.e. width padding is baked into the weights."""
    Cin, Cout = w.shape[2], w.shape[3]
    sel = np.zeros((3, W, W), np.float32)
    for dj in range(3):
        for wo in range(W):
            wi = wo + dj - 1
            if 0 <= wi < W:
                sel[dj, wi, wo] = 1.0
    m = jnp.einsum('jab,djco->dacbo', jnp.asarray(sel), w.astype(jnp.float32))
    return m.reshape(3 * W * Cin, W * Cout).astype(jnp.bfloat16)


def double_conv_pallas(x_nchw, w1, b1, g1, be1, w2, b2, g2, be2):
    """x_nchw: (N, Cin, H, W); w*: (3,3,Cin,Cout); b/g/be: (1, C). Returns (N, Cout, H, W).

    Conv biases b1/b2 are accepted but not used: under training-mode BatchNorm a per-channel
    constant shifts the batch mean and cancels exactly, so the result is identical."""
    N, Cin, H, W = x_nchw.shape
    Cmid = w1.shape[-1]
    Cout = w2.shape[-1]
    del b1, b2  # exact no-op under batch-stat BN

    # NCHW -> (N, H, W*Cin) bf16; H zero-pad once; K-concat the 3 vertical taps in the
    # wrapper so conv1 is a single tile-aligned matmul with no in-kernel copies or casts.
    x = jnp.transpose(x_nchw, (0, 2, 3, 1)).reshape(N, H, W * Cin).astype(jnp.bfloat16)
    xp = jnp.pad(x, ((0, 0), (1, 1), (0, 0)))
    lhs1 = jnp.concatenate([xp[:, 0:H], xp[:, 1:H + 1], xp[:, 2:H + 2]], axis=-1)
    lhs1 = lhs1.reshape(N * H, 3 * W * Cin)                  # (N*H, 3*W*Cin) bf16

    m1 = _banded_weights(w1, W)                              # (3*W*Cin,  W*Cmid) bf16
    m2 = _banded_weights(w2, W)                              # (3*W*Cmid, W*Cout) bf16
    bn1 = jnp.concatenate([jnp.tile(g1.astype(jnp.float32), (1, W)),
                           jnp.tile(be1.astype(jnp.float32), (1, W))], axis=0)  # (2, W*Cmid)
    bn2 = jnp.concatenate([jnp.tile(g2.astype(jnp.float32), (1, W)),
                           jnp.tile(be2.astype(jnp.float32), (1, W))], axis=0)  # (2, W*Cout)

    vmem = pl.BlockSpec(memory_space=pltpu.MemorySpace.VMEM)
    out = pl.pallas_call(
        functools.partial(double_conv_kernel, n=N, height=H, width=W),
        out_shape=jax.ShapeDtypeStruct((N * H, W * Cout), jnp.float32),
        in_specs=[vmem] * 5,
        out_specs=vmem,
    )(lhs1, m1, bn1, m2, bn2)

    # TODO(synk): skip this NHWC->NCHW transpose when the consumer accepts lane-dense output.
    return jnp.transpose(out.reshape(N, H, W, Cout), (0, 3, 1, 2))       # -> NCHW


# --------------------------------------------------------------------------- reference
def double_conv_ref(x_nchw, w1, b1, g1, be1, w2, b2, g2, be2):
    """Pure-JAX f32 reference with PyTorch semantics (train-mode BN, conv biases included)."""
    x = jnp.transpose(x_nchw, (0, 2, 3, 1)).astype(jnp.float32)
    N, H, W, _ = x.shape

    def conv3x3(xi, w, b):
        cin, cout = w.shape[2], w.shape[3]
        xp = jnp.pad(xi, ((0, 0), (1, 1), (1, 1), (0, 0)))
        acc = jnp.zeros((N * H * W, cout), jnp.float32)
        for k in range(9):
            di, dj = k // 3, k % 3
            patch = xp[:, di:di + H, dj:dj + W, :].reshape(N * H * W, cin)
            acc = acc + jnp.dot(patch, w[di, dj], preferred_element_type=jnp.float32,
                                precision=jax.lax.Precision.HIGHEST)
        return acc + b

    def bn_relu(y, gamma, beta):
        mean = jnp.mean(y, axis=0, keepdims=True)
        var = jnp.mean((y - mean) ** 2, axis=0, keepdims=True)
        return jnp.maximum((y - mean) * jax.lax.rsqrt(var + EPS) * gamma + beta, 0.0)

    h = bn_relu(conv3x3(x, w1, b1), g1, be1).reshape(N, H, W, -1)
    o = bn_relu(conv3x3(h, w2, b2), g2, be2).reshape(N, H, W, -1)
    return jnp.transpose(o, (0, 3, 1, 2))


if __name__ == "__main__":
    N, Cin, H, W = 2, 4, 16, 16
    Cout = 8
    Cmid = Cout  # mid_channel=None -> mid_channel = out_channel

    key = jax.random.PRNGKey(0)
    ks = jax.random.split(key, 9)
    x = jax.random.normal(ks[0], (N, Cin, H, W), jnp.float32)

    w1 = 0.1 * jax.random.normal(ks[1], (3, 3, Cin, Cmid), jnp.float32)
    b1 = 0.1 * jax.random.normal(ks[2], (1, Cmid), jnp.float32)
    g1 = 1.0 + 0.1 * jax.random.normal(ks[3], (1, Cmid), jnp.float32)
    be1 = 0.1 * jax.random.normal(ks[4], (1, Cmid), jnp.float32)

    w2 = 0.1 * jax.random.normal(ks[5], (3, 3, Cmid, Cout), jnp.float32)
    b2 = 0.1 * jax.random.normal(ks[6], (1, Cout), jnp.float32)
    g2 = 1.0 + 0.1 * jax.random.normal(ks[7], (1, Cout), jnp.float32)
    be2 = 0.1 * jax.random.normal(ks[8], (1, Cout), jnp.float32)

    out = double_conv_pallas(x, w1, b1, g1, be1, w2, b2, g2, be2)
    out = jax.block_until_ready(out)
    assert out.shape == (N, Cout, H, W), out.shape

    ref = jax.block_until_ready(double_conv_ref(x, w1, b1, g1, be1, w2, b2, g2, be2))
    # bf16 MXU operands vs. f32-HIGHEST reference -> ~1e-2 worst-case deviation.
    assert jnp.allclose(out, ref, atol=2e-2, rtol=2e-2), float(jnp.max(jnp.abs(out - ref)))

    print("KERNEL_OK")
</pallas_src>

<mosaic_0001>
module attributes {stable_mosaic.version = 11 : i64} {
  func.func @double_conv_kernel(%arg0: memref<32x192xbf16, #tpu.memory_space<vmem>>, %arg1: memref<192x128xbf16, #tpu.memory_space<vmem>>, %arg2: memref<2x128xf32, #tpu.memory_space<vmem>>, %arg3: memref<384x128xbf16, #tpu.memory_space<vmem>>, %arg4: memref<2x128xf32, #tpu.memory_space<vmem>>, %arg5: memref<32x128xf32, #tpu.memory_space<vmem>>) attributes {dimension_semantics = [], scalar_prefetch = 0 : i64, scratch_operands = 0 : i64, tpu.core_type = #tpu.core_type<tc>} {
    %c0 = arith.constant 0 : index
    %c0_0 = arith.constant 0 : index
    %0 = vector.load %arg0[%c0, %c0_0] : memref<32x192xbf16, #tpu.memory_space<vmem>>, vector<32x192xbf16>
    %c0_1 = arith.constant 0 : index
    %c0_2 = arith.constant 0 : index
    %1 = vector.load %arg1[%c0_1, %c0_2] : memref<192x128xbf16, #tpu.memory_space<vmem>>, vector<192x128xbf16>
    %cst = arith.constant dense<0.000000e+00> : vector<32x128xf32>
    %2 = tpu.matmul %0, %1, %cst {dimension_numbers = #tpu.dot_dimension_numbers<[1], [0], [0], [1], [0, 0, 1, 1], [], []>} : vector<32x192xbf16>, vector<192x128xbf16>, vector<32x128xf32> -> vector<32x128xf32>
    %c0_3 = arith.constant 0 : index
    %c0_4 = arith.constant 0 : index
    %3 = vector.load %arg2[%c0_3, %c0_4] : memref<2x128xf32, #tpu.memory_space<vmem>>, vector<1x128xf32>
    %c1 = arith.constant 1 : index
    %c0_5 = arith.constant 0 : index
    %4 = vector.load %arg2[%c1, %c0_5] : memref<2x128xf32, #tpu.memory_space<vmem>>, vector<1x128xf32>
    %cst_6 = arith.constant dense<0.000000e+00> : vector<128xf32>
    %5 = vector.multi_reduction <add>, %2, %cst_6 [0] : vector<32x128xf32> to vector<128xf32>
    %6 = vector.shape_cast %5 : vector<128xf32> to vector<1x128xf32>
    %7 = arith.mulf %2, %2 : vector<32x128xf32>
    %cst_7 = arith.constant dense<0.000000e+00> : vector<128xf32>
    %8 = vector.multi_reduction <add>, %7, %cst_7 [0] : vector<32x128xf32> to vector<128xf32>
    %9 = vector.shape_cast %8 : vector<128xf32> to vector<1x128xf32>
    %c8_i32 = arith.constant 8 : i32
    %10 = tpu.dynamic_rotate %6 by %c8_i32 dim 1 : vector<1x128xf32>, i32 -> vector<1x128xf32>
    %11 = arith.addf %6, %10 : vector<1x128xf32>
    %c16_i32 = arith.constant 16 : i32
    %12 = tpu.dynamic_rotate %11 by %c16_i32 dim 1 : vector<1x128xf32>, i32 -> vector<1x128xf32>
    %13 = arith.addf %11, %12 : vector<1x128xf32>
    %c32_i32 = arith.constant 32 : i32
    %14 = tpu.dynamic_rotate %13 by %c32_i32 dim 1 : vector<1x128xf32>, i32 -> vector<1x128xf32>
    %15 = arith.addf %13, %14 : vector<1x128xf32>
    %c64_i32 = arith.constant 64 : i32
    %16 = tpu.dynamic_rotate %15 by %c64_i32 dim 1 : vector<1x128xf32>, i32 -> vector<1x128xf32>
    %17 = arith.addf %15, %16 : vector<1x128xf32>
    %c8_i32_8 = arith.constant 8 : i32
    %18 = tpu.dynamic_rotate %9 by %c8_i32_8 dim 1 : vector<1x128xf32>, i32 -> vector<1x128xf32>
    %19 = arith.addf %9, %18 : vector<1x128xf32>
    %c16_i32_9 = arith.constant 16 : i32
    %20 = tpu.dynamic_rotate %19 by %c16_i32_9 dim 1 : vector<1x128xf32>, i32 -> vector<1x128xf32>
    %21 = arith.addf %19, %20 : vector<1x128xf32>
    %c32_i32_10 = arith.constant 32 : i32
    %22 = tpu.dynamic_rotate %21 by %c32_i32_10 dim 1 : vector<1x128xf32>, i32 -> vector<1x128xf32>
    %23 = arith.addf %21, %22 : vector<1x128xf32>
    %c64_i32_11 = arith.constant 64 : i32
    %24 = tpu.dynamic_rotate %23 by %c64_i32_11 dim 1 : vector<1x128xf32>, i32 -> vector<1x128xf32>
    %25 = arith.addf %23, %24 : vector<1x128xf32>
    %cst_12 = arith.constant 0.001953125 : f32
    %26 = vector.broadcast %cst_12 : f32 to vector<1x128xf32>
    %27 = arith.mulf %17, %26 : vector<1x128xf32>
    %cst_13 = arith.constant 0.001953125 : f32
    %28 = vector.broadcast %cst_13 : f32 to vector<1x128xf32>
    %29 = arith.mulf %25, %28 : vector<1x128xf32>
    %30 = arith.mulf %27, %27 : vector<1x128xf32>
    %31 = arith.subf %29, %30 : vector<1x128xf32>
    %cst_14 = arith.constant 0.000000e+00 : f32
    %32 = vector.broadcast %cst_14 : f32 to vector<1x128xf32>
    %33 = arith.maximumf %31, %32 : vector<1x128xf32>
    %cst_15 = arith.constant 9.99999974E-6 : f32
    %34 = vector.broadcast %cst_15 : f32 to vector<1x128xf32>
    %35 = arith.addf %33, %34 : vector<1x128xf32>
    %36 = math.rsqrt %35 : vector<1x128xf32>
    %37 = arith.mulf %3, %36 : vector<1x128xf32>
    %38 = arith.mulf %27, %37 : vector<1x128xf32>
    %39 = arith.subf %4, %38 : vector<1x128xf32>
    %40 = vector.broadcast %37 : vector<1x128xf32> to vector<32x128xf32>
    %41 = arith.mulf %2, %40 : vector<32x128xf32>
    %42 = vector.broadcast %39 : vector<1x128xf32> to vector<32x128xf32>
    %43 = arith.addf %41, %42 : vector<32x128xf32>
    %cst_16 = arith.constant 0.000000e+00 : f32
    %44 = vector.broadcast %cst_16 : f32 to vector<32x128xf32>
    %45 = arith.maximumf %43, %44 : vector<32x128xf32>
    %46 = tpu.iota {dimensions = array<i32: 0>} : vector<32x128xi32>
    %c16_i32_17 = arith.constant 16 : i32
    %c0_i32 = arith.constant 0 : i32
    %47 = arith.cmpi eq, %c16_i32_17, %c0_i32 : i32
    %c1_i32 = arith.constant 1 : i32
    %48 = arith.select %47, %c1_i32, %c16_i32_17 : i32
    %49 = vector.broadcast %48 : i32 to vector<32x128xi32>
    %50 = arith.remsi %46, %49 : vector<32x128xi32>
    %c0_i32_18 = arith.constant 0 : i32
    %51 = vector.broadcast %c0_i32_18 : i32 to vector<32x128xi32>
    %52 = arith.cmpi ne, %50, %51 : vector<32x128xi32>
    %c0_i32_19 = arith.constant 0 : i32
    %53 = vector.broadcast %c0_i32_19 : i32 to vector<32x128xi32>
    %54 = arith.cmpi slt, %50, %53 : vector<32x128xi32>
    %c0_i32_20 = arith.constant 0 : i32
    %55 = arith.cmpi slt, %48, %c0_i32_20 : i32
    %56 = vector.broadcast %55 : i1 to vector<32x128xi1>
    %57 = vector.broadcast %56 : vector<32x128xi1> to vector<32x128xi1>
    %58 = arith.xori %54, %57 : vector<32x128xi1>
    %59 = arith.andi %58, %52 : vector<32x128xi1>
    %60 = vector.broadcast %48 : i32 to vector<32x128xi32>
    %61 = arith.addi %50, %60 : vector<32x128xi32>
    %62 = arith.select %59, %61, %50 : vector<32x128xi1>, vector<32x128xi32>
    %c0_i32_21 = arith.constant 0 : i32
    %63 = vector.broadcast %c0_i32_21 : i32 to vector<32x128xi32>
    %64 = arith.cmpi eq, %62, %63 : vector<32x128xi32>
    %c1_i32_22 = arith.constant 1 : i32
    %65 = tpu.dynamic_rotate %45 by %c1_i32_22 dim 0 : vector<32x128xf32>, i32 -> vector<32x128xf32>
    %cst_23 = arith.constant 0.000000e+00 : f32
    %66 = vector.broadcast %cst_23 : f32 to vector<32x128xf32>
    %67 = arith.select %64, %66, %65 : vector<32x128xi1>, vector<32x128xf32>
    %c15_i32 = arith.constant 15 : i32
    %68 = vector.broadcast %c15_i32 : i32 to vector<32x128xi32>
    %69 = arith.cmpi eq, %62, %68 : vector<32x128xi32>
    %c31_i32 = arith.constant 31 : i32
    %70 = tpu.dynamic_rotate %45 by %c31_i32 dim 0 : vector<32x128xf32>, i32 -> vector<32x128xf32>
    %cst_24 = arith.constant 0.000000e+00 : f32
    %71 = vector.broadcast %cst_24 : f32 to vector<32x128xf32>
    %72 = arith.select %69, %71, %70 : vector<32x128xi1>, vector<32x128xf32>
    %73 = tpu.concatenate %67, %45, %72 in 1 : vector<32x128xf32>, vector<32x128xf32>, vector<32x128xf32> -> vector<32x384xf32>
    %74 = arith.truncf %73 : vector<32x384xf32> to vector<32x384xbf16>
    %c0_25 = arith.constant 0 : index
    %c0_26 = arith.constant 0 : index
    %75 = vector.load %arg3[%c0_25, %c0_26] : memref<384x128xbf16, #tpu.memory_space<vmem>>, vector<384x128xbf16>
    %cst_27 = arith.constant dense<0.000000e+00> : vector<32x128xf32>
    %76 = tpu.matmul %74, %75, %cst_27 {dimension_numbers = #tpu.dot_dimension_numbers<[1], [0], [0], [1], [0, 0, 1, 1], [], []>} : vector<32x384xbf16>, vector<384x128xbf16>, vector<32x128xf32> -> vector<32x128xf32>
    %c0_28 = arith.constant 0 : index
    %c0_29 = arith.constant 0 : index
    %77 = vector.load %arg4[%c0_28, %c0_29] : memref<2x128xf32, #tpu.memory_space<vmem>>, vector<1x128xf32>
    %c1_30 = arith.constant 1 : index
    %c0_31 = arith.constant 0 : index
    %78 = vector.load %arg4[%c1_30, %c0_31] : memref<2x128xf32, #tpu.memory_space<vmem>>, vector<1x128xf32>
    %cst_32 = arith.constant dense<0.000000e+00> : vector<128xf32>
    %79 = vector.multi_reduction <add>, %76, %cst_32 [0] : vector<32x128xf32> to vector<128xf32>
    %80 = vector.shape_cast %79 : vector<128xf32> to vector<1x128xf32>
    %81 = arith.mulf %76, %76 : vector<32x128xf32>
    %cst_33 = arith.constant dense<0.000000e+00> : vector<128xf32>
    %82 = vector.multi_reduction <add>, %81, %cst_33 [0] : vector<32x128xf32> to vector<128xf32>
    %83 = vector.shape_cast %82 : vector<128xf32> to vector<1x128xf32>
    %c8_i32_34 = arith.constant 8 : i32
    %84 = tpu.dynamic_rotate %80 by %c8_i32_34 dim 1 : vector<1x128xf32>, i32 -> vector<1x128xf32>
    %85 = arith.addf %80, %84 : vector<1x128xf32>
    %c16_i32_35 = arith.constant 16 : i32
    %86 = tpu.dynamic_rotate %85 by %c16_i32_35 dim 1 : vector<1x128xf32>, i32 -> vector<1x128xf32>
    %87 = arith.addf %85, %86 : vector<1x128xf32>
    %c32_i32_36 = arith.constant 32 : i32
    %88 = tpu.dynamic_rotate %87 by %c32_i32_36 dim 1 : vector<1x128xf32>, i32 -> vector<1x128xf32>
    %89 = arith.addf %87, %88 : vector<1x128xf32>
    %c64_i32_37 = arith.constant 64 : i32
    %90 = tpu.dynamic_rotate %89 by %c64_i32_37 dim 1 : vector<1x128xf32>, i32 -> vector<1x128xf32>
    %91 = arith.addf %89, %90 : vector<1x128xf32>
    %c8_i32_38 = arith.constant 8 : i32
    %92 = tpu.dynamic_rotate %83 by %c8_i32_38 dim 1 : vector<1x128xf32>, i32 -> vector<1x128xf32>
    %93 = arith.addf %83, %92 : vector<1x128xf32>
    %c16_i32_39 = arith.constant 16 : i32
    %94 = tpu.dynamic_rotate %93 by %c16_i32_39 dim 1 : vector<1x128xf32>, i32 -> vector<1x128xf32>
    %95 = arith.addf %93, %94 : vector<1x128xf32>
    %c32_i32_40 = arith.constant 32 : i32
    %96 = tpu.dynamic_rotate %95 by %c32_i32_40 dim 1 : vector<1x128xf32>, i32 -> vector<1x128xf32>
    %97 = arith.addf %95, %96 : vector<1x128xf32>
    %c64_i32_41 = arith.constant 64 : i32
    %98 = tpu.dynamic_rotate %97 by %c64_i32_41 dim 1 : vector<1x128xf32>, i32 -> vector<1x128xf32>
    %99 = arith.addf %97, %98 : vector<1x128xf32>
    %cst_42 = arith.constant 0.001953125 : f32
    %100 = vector.broadcast %cst_42 : f32 to vector<1x128xf32>
    %101 = arith.mulf %91, %100 : vector<1x128xf32>
    %cst_43 = arith.constant 0.001953125 : f32
    %102 = vector.broadcast %cst_43 : f32 to vector<1x128xf32>
    %103 = arith.mulf %99, %102 : vector<1x128xf32>
    %104 = arith.mulf %101, %101 : vector<1x128xf32>
    %105 = arith.subf %103, %104 : vector<1x128xf32>
    %cst_44 = arith.constant 0.000000e+00 : f32
    %106 = vector.broadcast %cst_44 : f32 to vector<1x128xf32>
    %107 = arith.maximumf %105, %106 : vector<1x128xf32>
    %cst_45 = arith.constant 9.99999974E-6 : f32
    %108 = vector.broadcast %cst_45 : f32 to vector<1x128xf32>
    %109 = arith.addf %107, %108 : vector<1x128xf32>
    %110 = math.rsqrt %109 : vector<1x128xf32>
    %111 = arith.mulf %77, %110 : vector<1x128xf32>
    %112 = arith.mulf %101, %111 : vector<1x128xf32>
    %113 = arith.subf %78, %112 : vector<1x128xf32>
    %114 = vector.broadcast %111 : vector<1x128xf32> to vector<32x128xf32>
    %115 = arith.mulf %76, %114 : vector<32x128xf32>
    %116 = vector.broadcast %113 : vector<1x128xf32> to vector<32x128xf32>
    %117 = arith.addf %115, %116 : vector<32x128xf32>
    %cst_46 = arith.constant 0.000000e+00 : f32
    %118 = vector.broadcast %cst_46 : f32 to vector<32x128xf32>
    %119 = arith.maximumf %117, %118 : vector<32x128xf32>
    %c0_47 = arith.constant 0 : index
    %c0_48 = arith.constant 0 : index
    %120 = vector.load %arg5[%c0_47, %c0_48] : memref<32x128xf32, #tpu.memory_space<vmem>>, vector<32x128xf32>
    tpu.vector_store %arg5[%c0_47, %c0_48], %119 {strides = array<i32>} : memref<32x128xf32, #tpu.memory_space<vmem>>, vector<32x128xf32>,
    return
  }
}

</mosaic_0001>

<bundles_post_ra>
// kernel: tpu_custom_call.1
= control target key start
LH: loop header
LB: loop body
LE: loop exit
PB: predicated region body
PF: predicated region fallthrough
CT: control target
= control target key end

     0   :  { %10 = vsyncpa [#allocation3], 0  ;;  %s1298_s0 = inlined_call_operand.hbm [shape: bf16[32,192], index: 0, kind: input, shape index: {}]   ;;  %s1299_s1 = inlined_call_operand.hbm [shape: bf16[192,128], index: 1, kind: input, shape index: {}]   ;;  %s1300_s2 = inlined_call_operand.hbm [shape: f32[2,128], index: 2, kind: input, shape index: {}]   ;;  %s1301_s3 = inlined_call_operand.hbm [shape: bf16[384,128], index: 3, kind: input, shape index: {}]   ;;  %s1302_s4 = inlined_call_operand.vmem [shape: f32[2,128], index: 4, kind: input, shape index: {}]   ;;  %s1303_s5 = inlined_call_operand.hbm [shape: f32[32,128], index: 5, kind: output, shape index: {}]  }
   0x1   :  { %11 = vsyncpa [#allocation6], 0 }
   0x2   :  { %12 = vsyncpa [#allocation9], 0  ;;  %s31_s20 = sshll.u32 %s1299_s1, 4  ;;  %s32_s20 = int_to_ptr.hbm [resolvable:$true] %s31_s20 }
   0x3   :  { %13 = vsyncpa [#allocation4], 0  ;;  %s1141_s21 = smov [#allocation5]   ;;  %s18_s25 = sshll.u32 %s1298_s0, 4  ;;  %s19_s25 = int_to_ptr.hbm [resolvable:$true] %s18_s25 }
   0x4   :  { %s33_s22 = sshll.u32 %s1141_s21, 4  ;;  %s1142_s26 = smov 64   ;;  %s34_s22 = int_to_ptr.vmem [resolvable:$true] %s33_s22 }
   0x5   :  { %s1143_s27 = smov 4   ;;  %s1144_s28 = smov [#allocation2]  }
   0x6   :  { %39 = dma.hbm_to_vmem [thread:$0]  %s32_s20, 1536, %s34_s22, [#allocation6], %s1142_s26, %s1142_s26, %s1143_s27  }
   0x7   :  { %s20_s29 = sshll.u32 %s1144_s28, 4  ;;  %s1145_s30 = smov 128   ;;  %s21_s29 = int_to_ptr.vmem [resolvable:$true] %s20_s29 }
   0x8   :  { %s1146_s1 = smov 8   ;;  %s45_s8 = sshll.u32 %s1300_s2, 4  ;;  %s46_s8 = int_to_ptr.hbm [resolvable:$true] %s45_s8 }
   0x9   :  { %26 = dma.hbm_to_vmem [thread:$0]  %s19_s25, 512, %s21_s29, [#allocation3], %s1145_s30, %s1145_s30, %s1146_s1  }
   0xa   :  { %s1147_s0 = smov [#allocation7]   ;;  %s55_s12 = sshll.u32 %s1301_s3, 4  ;;  %s56_s12 = int_to_ptr.hbm [resolvable:$true] %s55_s12 }
   0xb   :  { %s47_s9 = sshll.u32 %s1147_s0, 4  ;;  %s1148_s13 = smov [#allocation8]   ;;  %s48_s9 = int_to_ptr.vmem [resolvable:$true] %s47_s9 }
   0xc   :  { %50 = dma.hbm_to_vmem [thread:$0]  %s46_s8, 32, %s48_s9, [#allocation6]  }
   0xd   :  { %s57_s14 = sshll.u32 %s1148_s13, 4  ;;  %s58_s14 = int_to_ptr.vmem [resolvable:$true] %s57_s14 }
   0xe   :  { %63 = dma.hbm_to_vmem [thread:$0]  %s56_s12, 3072, %s58_s14, [#allocation9], %s1142_s26, %s1142_s26, %s1143_s27  }
   0xf   :  { %1133 = dma.done.wait [#allocation3], 512  }
  0x10   :  { %1134 = vsyncadd [#allocation3], 4294966784 }
  0x11   :  { %1135 = dma.done.wait [#allocation6], 1568  }
  0x12   :  { %1136 = vsyncadd [#allocation6], 4294965728 }
  0x13   :  { %1137 = dma.done.wait [#allocation9], 3072  }
  0x14   :  { %1138 = vsyncadd [#allocation9], 4294964224  ;;  %v964_v0 = vld [vmem:[#allocation5 + $0x38] sm:$0xff]  ;;  %v963_v2 = vld [vmem:[#allocation5 + $0x30] sm:$0xff]  ;;  %vm201_vm0 = vcmask 523264   ;;  %s1149_s2 = smov 16  }
  0x15   :  { %v968_v1 = vld [vmem:[#allocation5 + $0x58] sm:$0xff]  ;;  %208 = vmatpush.bf16.msra.mxu0 %v964_v0  ;;  %v967_v3 = vld [vmem:[#allocation5 + $0x50] sm:$0xff]  ;;  %v962_v4 = vld [vmem:[#allocation5 + $0x28] sm:$0xff]  ;;  %s1150_s3 = smov 32   ;;  %vm1151_vm8 = vmmov 1   ;;  %s760_s22 = sshll.u32 %s1303_s5, 4  ;;  %s761_s22 = int_to_ptr.hbm [resolvable:$true] %s760_s22 }
  0x16   :  { %231 = vmatpush.bf16.msra.mxu1 %v968_v1  ;;  %v966_v5 = vld [vmem:[#allocation5 + $0x48] sm:$0xff]  ;;  %v961_v6 = vld [vmem:[#allocation5 + $0x20] sm:$0xff]  ;;  %v960_v10 = vld [vmem:[#allocation5 + $0x18] sm:$0xff] }
  0x17   :  { %v965_v7 = vld [vmem:[#allocation5 + $0x40] sm:$0xff]  ;;  %v779_v9 = vld [vmem:[#allocation2 + $0x8] sm:$0xf0]  ;;  %v959_v12 = vld [vmem:[#allocation5 + $0x10] sm:$0xff] }
  0x18   :  { %v953_v8 = vld [vmem:[#allocation2 + $0x4] sm:$0xf]  ;;  %v958_v13 = vld [vmem:[#allocation5 + $0x8] sm:$0xff]  ;;  %v777_v15 = vld [vmem:[#allocation2] sm:$0xf] }
  0x19   :  { %209 = vmatpush.bf16.msra.mxu0 %v963_v2  ;;  %v782_v11 = vor.u32 %v953_v8, %v779_v9  ;;  %v957_v14 = vld [vmem:[#allocation5] sm:$0xff]  ;;  %v954_v16 = vld [vmem:[#allocation2 + $0x4] sm:$0xf0]  ;;  %v955_v17 = vld [vmem:[#allocation2 + $0x14] sm:$0xf] }
  0x1a   :  { %232 = vmatpush.bf16.msra.mxu1 %v967_v3  ;;  %v787_v18 = vld [vmem:[#allocation2 + $0x18] sm:$0xf0]  ;;  %v778_v19 = vor.u32 %v954_v16, %v777_v15  ;;  %v785_v21 = vld [vmem:[#allocation2 + $0x10] sm:$0xf]  ;;  %v956_v22 = vld [vmem:[#allocation2 + $0x14] sm:$0xf0] }
  0x1b   :  { %v790_v20 = vor.u32 %v955_v17, %v787_v18  ;;  %v786_v23 = vor.u32 %v956_v22, %v785_v21  ;;  %v992_v8 = vld [vmem:[#allocation8 + $0xb8] sm:$0xff]  ;;  %v983_v9 = vld [vmem:[#allocation8 + $0x70] sm:$0xff]  ;;  %v981_v15 = vld [vmem:[#allocation8 + $0x60] sm:$0xff] }
  0x1c   :  { %v973_v17 = vld [vmem:[#allocation8 + $0x20] sm:$0xff]  ;;  %v972_v21 = vld [vmem:[#allocation8 + $0x18] sm:$0xff] }
  0x1d   :  { %210 = vmatpush.bf16.msra.mxu0 %v962_v4  ;;  %v989_v18 = vld [vmem:[#allocation8 + $0xa0] sm:$0xff]  ;;  %v988_v22 = vld [vmem:[#allocation8 + $0x98] sm:$0xff] }
  0x1e   :  { %233 = vmatpush.bf16.msra.mxu1 %v966_v5 }
  0x21   :  { %211 = vmatpush.bf16.msra.mxu0 %v961_v6  ;;  %v984_v6 = vld [vmem:[#allocation8 + $0x78] sm:$0xff] }
  0x22   :  { %234 = vmatpush.bf16.msra.mxu1 %v965_v7  ;;  %631 = vmatpush.bf16.msra.mxu3 %v984_v6  ;;  %v976_v7 = vld [vmem:[#allocation8 + $0x38] sm:$0xff] }
  0x23   :  { %612 = vmatpush.bf16.msra.mxu2 %v976_v7 }
  0x25   :  { %212 = vmatpush.bf16.msra.mxu0 %v960_v10  ;;  %839 = vmatmul.msk.bf16.vlgmr.msra.gmra.mxu1 %vm201_vm0, %v782_v11  ;;  %v975_v10 = vld [vmem:[#allocation8 + $0x30] sm:$0xff] }
  0x26   :  { %650 = vmatpush.bf16.msrb.mxu1 %v992_v8  ;;  %632 = vmatpush.bf16.msra.mxu3 %v983_v9  ;;  %v991_v11 = vld [vmem:[#allocation8 + $0xb0] sm:$0xff] }
  0x27   :  { %613 = vmatpush.bf16.msra.mxu2 %v975_v10 }
  0x29   :  { %213 = vmatpush.bf16.msra.mxu0 %v959_v12  ;;  %v982_v12 = vld [vmem:[#allocation8 + $0x68] sm:$0xff] }
  0x2a   :  { %651 = vmatpush.bf16.msrb.mxu1 %v991_v11  ;;  %633 = vmatpush.bf16.msra.mxu3 %v982_v12 }
  0x2d   :  { %214 = vmatpush.bf16.msra.mxu0 %v958_v13  ;;  %v974_v13 = vld [vmem:[#allocation8 + $0x28] sm:$0xff] }
  0x2e   :  { %614 = vmatpush.bf16.msra.mxu2 %v974_v13  ;;  %634 = vmatpush.bf16.msra.mxu3 %v981_v15 }
  0x31   :  { %215 = vmatpush.bf16.msra.mxu0 %v957_v14  ;;  %v990_v14 = vld [vmem:[#allocation8 + $0xa8] sm:$0xff] }
  0x32   :  { %652 = vmatpush.bf16.msrb.mxu1 %v990_v14  ;;  %615 = vmatpush.bf16.msra.mxu2 %v973_v17 }
  0x34   :  { %216 = vmatmul.bf16.vlgmr.msra.gmra.mxu0 %v778_v19  ;;  %v980_v19 = vld [vmem:[#allocation8 + $0x58] sm:$0xff] }
  0x35   :  { %840 = vmatmul.msk.bf16.gmra.mxu1 %vm201_vm0, %v790_v20  ;;  %635 = vmatpush.bf16.msra.mxu3 %v980_v19 }
  0x36   :  { %653 = vmatpush.bf16.msrb.mxu1 %v989_v18  ;;  %616 = vmatpush.bf16.msra.mxu2 %v972_v21 }
  0x3a   :  { %654 = vmatpush.bf16.msrb.mxu1 %v988_v22 }
  0x44   :  { %221 = vmatmul.bf16.gmra.mxu0 %v786_v23  ;;  %v979_v23 = vld [vmem:[#allocation8 + $0x50] sm:$0xff] }
  0x45   :  { %636 = vmatpush.bf16.msra.mxu3 %v979_v23 }
  0xa2   :  { %v236_v24 = vpop.f32.mrf.mxu1 }
  0xaa   :  { %v238_v26 = vpop.f32.mrf.mxu1 }
  0xb1   :  { %v217_v25 = vpop.f32.mrf.mxu0 }
  0xb2   :  { %v241_v28 = vpop.f32.mrf.mxu1  ;;  %v1206_v31 = vadd.f32 %v236_v24, %v217_v25  ;;  %v971_v25 = vld [vmem:[#allocation8 + $0x10] sm:$0xff] }
  0xb3   :  { %617 = vmatpush.bf16.msra.mxu2 %v971_v25 }
  0xb4   :  { %v257_v34 = vmul.f32 %v1206_v31, %v1206_v31 }
  0xb9   :  { %v219_v27 = vpop.f32.mrf.mxu0 }
  0xba   :  { %v1204_v30 = vadd.f32 %v238_v26, %v219_v27  ;;  %v243_v37 = vpop.f32.mrf.mxu1  ;;  %v987_v26 = vld [vmem:[#allocation8 + $0x90] sm:$0xff] }
  0xbb   :  { %655 = vmatpush.bf16.msrb.mxu1 %v987_v26 }
  0xbc   :  { %v258_v33 = vmul.f32 %v1204_v30, %v1204_v30  ;;  %v248_v35 = vadd.f32 %v1204_v30, %v1206_v31 }
  0xbe   :  { %v261_v39 = vadd.f32 %v258_v33, %v257_v34 }
  0xc1   :  { %v222_v29 = vpop.f32.mrf.mxu0 }
  0xc2   :  { %v1208_v32 = vadd.f32 %v241_v28, %v222_v29  ;;  %v978_v28 = vld [vmem:[#allocation8 + $0x48] sm:$0xff] }
  0xc3   :  { %637 = vmatpush.bf16.msra.mxu3 %v978_v28 }
  0xc4   :  { %v259_v36 = vmul.f32 %v1208_v32, %v1208_v32  ;;  %v249_v40 = vadd.f32 %v248_v35, %v1208_v32  ;;  %v970_v35 = vld [vmem:[#allocation8 + $0x8] sm:$0xff] }
  0xc5   :  { %618 = vmatpush.bf16.msra.mxu2 %v970_v35 }
  0xc6   :  { %v262_v42 = vadd.f32 %v261_v39, %v259_v36  ;;  %v986_v36 = vld [vmem:[#allocation8 + $0x88] sm:$0xff] }
  0xc7   :  { %656 = vmatpush.bf16.msrb.mxu1 %v986_v36 }
  0xc9   :  { %v224_v38 = vpop.f32.mrf.mxu0 }
  0xca   :  { %v1219_v41 = vadd.f32 %v243_v37, %v224_v38  ;;  %v977_v37 = vld [vmem:[#allocation8 + $0x40] sm:$0xff] }
  0xcb   :  { %638 = vmatpush.bf16.msra.mxu3 %v977_v37 }
  0xcc   :  { %v250_v43 = vadd.f32 %v249_v40, %v1219_v41  ;;  %v260_v44 = vmul.f32 %v1219_v41, %v1219_v41  ;;  %v969_v40 = vld [vmem:[#allocation8] sm:$0xff] }
  0xcd   :  { %619 = vmatpush.bf16.msra.mxu2 %v969_v40 }
  0xce   :  { %v251_v45 = vrot.slane %v250_v43, 4  ;;  %v263_v46 = vadd.f32 %v262_v42, %v260_v44 }
  0xd0   :  { %v252_v47 = vadd.f32 %v251_v45, %v250_v43  ;;  %v264_v48 = vrot.slane %v263_v46, 4  ;;  %v985_v43 = vld [vmem:[#allocation8 + $0x80] sm:$0xff] }
  0xd1   :  { %657 = vmatpush.bf16.msrb.mxu1 %v985_v43 }
  0xd2   :  { %v253_v49 = vrot.slane %v252_v47, 2  ;;  %v265_v50 = vadd.f32 %v264_v48, %v263_v46 }
  0xd4   :  { %v254_v51 = vadd.f32 %v253_v49, %v252_v47  ;;  %v266_v52 = vrot.slane %v265_v50, 2  ;;  %v327_v49 = vlaneseq }
  0xd6   :  { %v255_v53 = vrot.slane %v254_v51, 1  ;;  %v267_v55 = vadd.f32 %v266_v52, %v265_v50  ;;  %v246_v50 = vld [vmem:[#allocation7] sm:$0x1] }
  0xd8   :  { %v256_v54 = vadd.f32 %v255_v53, %v254_v51  ;;  %v268_v56 = vrot.slane %v267_v55, 1  ;;  %v328_v53 = vshrl.u32 %v327_v49, 7 }
  0xda   :  { %270 = vrot.lane.b32.xlu0 %v256_v54, %s1146_s1  ;;  %v269_v57 = vadd.f32 %v268_v56, %v267_v55  ;;  %v247_v55 = vld [vmem:[#allocation7 + $0x1] sm:$0x1]  ;;  %vm388_vm4 = vcmp.lt.s32.totalorder %v328_v53, 1  ;;  %vm405_vm6 = vcmp.lt.s32.totalorder %v328_v53, 7  ;;  %v330_v21 = vadd.s32 16, %v328_v53 }
  0xdb   :  { %v331_v22 = vadd.s32 24, %v328_v53 }
  0xdc   :  { %v350_v23 = vand.u32 15, %v330_v21 }
  0xde   :  { %vm994_vm11 = vcmp.ne.s32.totalorder %v350_v23, 0 }
  0xdf   :  { %vm942_vm13 = vmpackc.low %vm1151_vm8, %vm994_vm11 }
  0xe2   :  { %282 = vrot.lane.b32.xlu0 %v269_v57, %s1146_s1 }
 0x14c   :  { %v271_v58 = vpop.permute.xlu0 %270 }
 0x14d   :  { %v272_v59 = vadd.f32 %v271_v58, %v256_v54  ;;  %v329_v58 = vadd.s32 8, %v328_v53 }
 0x14f   :  { %273 = vrot.lane.b32.xlu1 %v272_v59, %s1149_s2 }
 0x154   :  { %v283_v60 = vpop.permute.xlu0 %282 }
 0x155   :  { %v284_v61 = vadd.f32 %v283_v60, %v269_v57 }
 0x157   :  { %285 = vrot.lane.b32.xlu1 %v284_v61, %s1149_s2 }
 0x1c1   :  { %v274_v62 = vpop.permute.xlu1 %273 }
 0x1c2   :  { %v275_v63 = vadd.f32 %v274_v62, %v272_v59 }
 0x1c4   :  { %276 = vrot.lane.b32.xlu2 %v275_v63, %s1150_s3 }
 0x1c9   :  { %v286_v0 = vpop.permute.xlu1 %285 }
 0x1ca   :  { %v287_v1 = vadd.f32 %v286_v0, %v284_v61 }
 0x1cc   :  { %288 = vrot.lane.b32.xlu2 %v287_v1, %s1150_s3 }
 0x21e   :  { %v277_v2 = vpop.permute.xlu2 %276 }
 0x21f   :  { %v278_v3 = vadd.f32 %v277_v2, %v275_v63  ;;  %v343_v2 = vand.u32 15, %v329_v58 }
 0x221   :  { %279 = vrot.lane.b32.xlu0 %v278_v3, %s1142_s26  ;;  %vm1236_vm7 = vcmp.ne.s32.totalorder %v343_v2, 15 }
 0x222   :  { %vm946_vm10 = vmpackc.low %vm1236_vm7, %vm1151_vm8 }
 0x226   :  { %v289_v4 = vpop.permute.xlu2 %288 }
 0x227   :  { %v290_v5 = vadd.f32 %v289_v4, %v287_v1  ;;  %v336_v1 = vand.u32 15, %v328_v53 }
 0x229   :  { %291 = vrot.lane.b32.xlu1 %v290_v5, %s1142_s26  ;;  %vm993_vm5 = vcmp.ne.s32.totalorder %v336_v1, 0 }
 0x22a   :  { %vm938_vm9 = vmpackc.low %vm1151_vm8, %vm993_vm5 }
 0x293   :  { %v280_v16 = vpop.permute.xlu0 %279 }
 0x294   :  { %v281_v20 = vadd.f32 %v280_v16, %v278_v3 }
 0x296   :  { %v294_v24 = vmul.f32 0.001953125, %v281_v20 }
 0x298   :  { %v296_v33 = vmul.f32 %v294_v24, %v294_v24 }
 0x29b   :  { %v292_v27 = vpop.permute.xlu1 %291 }
 0x29c   :  { %v293_v29 = vadd.f32 %v292_v27, %v290_v5 }
 0x29e   :  { %v295_v34 = vmul.f32 0.001953125, %v293_v29 }
 0x2a0   :  { %v297_v38 = vsub.f32 %v295_v34, %v296_v33 }
 0x2a2   :  { %v298_v39 = vmax.f32 %v297_v38, 0.0 }
 0x2a4   :  { %v299_v42 = vadd.f32 1e-05, %v298_v39 }
 0x2a6   :  { %1009 = vrsqrt.f32 %v299_v42  ;;  %vm306_vm2 = vweird.f32 %v299_v42 }
 0x2ac   :  { %v1010_v44 = vpop.eup %1009 }
 0x2ad   :  { %v301_v45 = vmul.f32 %v1010_v44, %v299_v42  ;;  %vm307_vm1 = vweird.f32 %v1010_v44 }
 0x2ae   :  { %vm308_vm3 = vmor %vm306_vm2, %vm307_vm1 }
 0x2af   :  { %v302_v46 = vmul.f32 %v1010_v44, %v301_v45 }
 0x2b1   :  { %v303_v47 = vmul.f32 0.5, %v302_v46 }
 0x2b3   :  { %v304_v48 = vsub.f32 1.5, %v303_v47 }
 0x2b5   :  { %v305_v51 = vmul.f32 %v1010_v44, %v304_v48 }
 0x2b7   :  { %v309_v52 = vsel %vm308_vm3, %v1010_v44, %v305_v51 }
 0x2b8   :  { %v310_v54 = vmul.f32 %v309_v52, %v246_v50 }
 0x2ba   :  { %v311_v56 = vmul.f32 %v310_v54, %v294_v24  ;;  %v313_v57 = vperm.slane %v310_v54, 0  ;;  %v357_v24 = vand.u32 15, %v331_v22 }
 0x2bc   :  { %v312_v59 = vsub.f32 %v247_v55, %v311_v56  ;;  %v314_v60 = vmul.f32 %v313_v57, %v1206_v31  ;;  %v315_v61 = vmul.f32 %v313_v57, %v1204_v30  ;;  %v317_v63 = vmul.f32 %v313_v57, %v1219_v41 }
 0x2bd   :  { %v316_v0 = vmul.f32 %v313_v57, %v1208_v32  ;;  %vm996_vm12 = vcmp.ne.s32.totalorder %v357_v24, 15 }
 0x2be   :  { %v318_v62 = vperm.slane %v312_v59, 0  ;;  %vm950_vm14 = vmpackc.low %vm996_vm12, %vm1151_vm8 }
 0x2c0   :  { %v319_v3 = vadd.f32 %v318_v62, %v314_v60  ;;  %v320_v4 = vadd.f32 %v318_v62, %v315_v61  ;;  %v322_v5 = vadd.f32 %v318_v62, %v317_v63  ;;  %v321_v6 = vadd.f32 %v318_v62, %v316_v0 }
 0x2c2   :  { %v323_v7 = vmax.f32 %v319_v3, 0.0  ;;  %v324_v8 = vmax.f32 %v320_v4, 0.0  ;;  %v326_v9 = vmax.f32 %v322_v5, 0.0  ;;  %v325_v10 = vmax.f32 %v321_v6, 0.0 }
 0x2c4   :  { %v401_v31 = vrot.slane %v323_v7, 1  ;;  %v402_v41 = vrot.slane %v324_v8, 1  ;;  %v415_v32 = vpack.c.bf16 %v324_v8, %v323_v7  ;;  %v384_v11 = vrot.slane %v323_v7, 7 }
 0x2c5   :  { %v385_v12 = vrot.slane %v324_v8, 7  ;;  %v387_v13 = vrot.slane %v326_v9, 7  ;;  %v403_v14 = vrot.slane %v325_v10, 1  ;;  %v386_v25 = vrot.slane %v325_v10, 7 }
 0x2c6   :  { %639 = vmatmul.bf16.vlgmr.msra.gmra.mxu3 %v415_v32  ;;  %v408_v15 = vsel %vm405_vm6, %v401_v31, %v402_v41  ;;  %v404_v26 = vrot.slane %v326_v9, 1  ;;  %v418_v27 = vpack.c.bf16 %v326_v9, %v325_v10 }
 0x2c7   :  { %v391_v16 = vsel %vm388_vm4, %v384_v11, %v385_v12  ;;  %v392_v17 = vsel %vm388_vm4, %v387_v13, %v384_v11  ;;  %v407_v18 = vsel %vm405_vm6, %v402_v41, %v403_v14  ;;  %v389_v28 = vsel %vm388_vm4, %v386_v25, %v387_v13 }
 0x2c8   :  { %v939_v19 = vpack.c.bf16 %v391_v16, %v392_v17  ;;  %v947_v20 = vpack.c.bf16 %v407_v18, %v408_v15  ;;  %v390_v29 = vsel %vm388_vm4, %v385_v12, %v386_v25  ;;  %v406_v33 = vsel %vm405_vm6, %v403_v14, %v404_v26 }
 0x2c9   :  { %v409_v34 = vsel %vm405_vm6, %v404_v26, %v401_v31  ;;  %v943_v35 = vpack.c.bf16 %v389_v28, %v390_v29 }
 0x2ca   :  { %940 = vmatmul.msk.bf16.vlgmr.msra.gmra.mxu2 %vm938_vm9, %v939_v19  ;;  %948 = vmatmul.msk.bf16.vlgmr.msrb.gmra.mxu1 %vm946_vm10, %v947_v20  ;;  %v951_v36 = vpack.c.bf16 %v409_v34, %v406_v33 }
 0x2d6   :  { %644 = vmatmul.bf16.gmra.mxu3 %v418_v27 }
 0x2da   :  { %944 = vmatmul.msk.bf16.gmra.mxu2 %vm942_vm13, %v943_v35  ;;  %952 = vmatmul.msk.bf16.gmra.mxu1 %vm950_vm14, %v951_v36 }
 0x347   :  { %v659_v37 = vpop.f32.mrf.mxu1 }
 0x349   :  { %v640_v38 = vpop.f32.mrf.mxu3 }
 0x34d   :  { %v621_v39 = vpop.f32.mrf.mxu2 }
 0x34e   :  { %v641_v48 = vadd.f32 %v640_v38, %v621_v39 }
 0x34f   :  { %v661_v42 = vpop.f32.mrf.mxu1 }
 0x350   :  { %v1256_v51 = vadd.f32 %v659_v37, %v641_v48 }
 0x351   :  { %v642_v40 = vpop.f32.mrf.mxu3 }
 0x352   :  { %v680_v56 = vmul.f32 %v1256_v51, %v1256_v51 }
 0x355   :  { %v623_v43 = vpop.f32.mrf.mxu2 }
 0x356   :  { %v643_v45 = vadd.f32 %v642_v40, %v623_v43  ;;  %v669_v43 = vld [vmem:[%s1302_s4] sm:$0x1] }
 0x357   :  { %v664_v46 = vpop.f32.mrf.mxu1 }
 0x358   :  { %v1254_v50 = vadd.f32 %v661_v42, %v643_v45 }
 0x359   :  { %v645_v44 = vpop.f32.mrf.mxu3 }
 0x35a   :  { %v681_v53 = vmul.f32 %v1254_v50, %v1254_v50  ;;  %v671_v57 = vadd.f32 %v1254_v50, %v1256_v51 }
 0x35c   :  { %v684_v61 = vadd.f32 %v681_v53, %v680_v56 }
 0x35d   :  { %v626_v47 = vpop.f32.mrf.mxu2 }
 0x35e   :  { %v646_v49 = vadd.f32 %v645_v44, %v626_v47  ;;  %v670_v47 = vld [vmem:[%s1302_s4 + $0x1] sm:$0x1]  ;;  %s1152_s4 = smov [#allocation10]  }
 0x35f   :  { %v666_v60 = vpop.f32.mrf.mxu1  ;;  %s758_s19 = sshll.u32 %s1152_s4, 4  ;;  %s759_s19 = int_to_ptr.vmem [resolvable:$true] %s758_s19 }
 0x360   :  { %v1258_v52 = vadd.f32 %v664_v46, %v646_v49 }
 0x361   :  { %v647_v54 = vpop.f32.mrf.mxu3 }
 0x362   :  { %v682_v58 = vmul.f32 %v1258_v52, %v1258_v52  ;;  %v672_v62 = vadd.f32 %v671_v57, %v1258_v52 }
 0x364   :  { %v685_v0 = vadd.f32 %v684_v61, %v682_v58 }
 0x365   :  { %v628_v55 = vpop.f32.mrf.mxu2 }
 0x366   :  { %v648_v59 = vadd.f32 %v647_v54, %v628_v55 }
 0x368   :  { %v1269_v63 = vadd.f32 %v666_v60, %v648_v59 }
 0x36a   :  { %v673_v1 = vadd.f32 %v672_v62, %v1269_v63  ;;  %v683_v2 = vmul.f32 %v1269_v63, %v1269_v63 }
 0x36c   :  { %v674_v3 = vrot.slane %v673_v1, 4  ;;  %v686_v4 = vadd.f32 %v685_v0, %v683_v2 }
 0x36e   :  { %v675_v5 = vadd.f32 %v674_v3, %v673_v1  ;;  %v687_v6 = vrot.slane %v686_v4, 4 }
 0x370   :  { %v676_v7 = vrot.slane %v675_v5, 2  ;;  %v688_v8 = vadd.f32 %v687_v6, %v686_v4 }
 0x372   :  { %v677_v9 = vadd.f32 %v676_v7, %v675_v5  ;;  %v689_v10 = vrot.slane %v688_v8, 2 }
 0x374   :  { %v678_v30 = vrot.slane %v677_v9, 1  ;;  %v690_v31 = vadd.f32 %v689_v10, %v688_v8 }
 0x376   :  { %v679_v41 = vadd.f32 %v678_v30, %v677_v9  ;;  %v691_v32 = vrot.slane %v690_v31, 1 }
 0x378   :  { %693 = vrot.lane.b32.xlu2 %v679_v41, %s1146_s1  ;;  %v692_v11 = vadd.f32 %v691_v32, %v690_v31 }
 0x37a   :  { %705 = vrot.lane.b32.xlu0 %v692_v11, %s1146_s1 }
 0x3d2   :  { %v694_v12 = vpop.permute.xlu2 %693 }
 0x3d3   :  { %v695_v13 = vadd.f32 %v694_v12, %v679_v41 }
 0x3d5   :  { %696 = vrot.lane.b32.xlu1 %v695_v13, %s1149_s2 }
 0x3ec   :  { %v706_v14 = vpop.permute.xlu0 %705 }
 0x3ed   :  { %v707_v15 = vadd.f32 %v706_v14, %v692_v11 }
 0x3ef   :  { %708 = vrot.lane.b32.xlu2 %v707_v15, %s1149_s2 }
 0x447   :  { %v697_v16 = vpop.permute.xlu1 %696 }
 0x448   :  { %v698_v17 = vadd.f32 %v697_v16, %v695_v13 }
 0x449   :  { %v709_v18 = vpop.permute.xlu2 %708 }
 0x44a   :  { %v710_v19 = vadd.f32 %v709_v18, %v707_v15  ;;  %699 = vrot.lane.b32.xlu0 %v698_v17, %s1150_s3 }
 0x44c   :  { %711 = vrot.lane.b32.xlu1 %v710_v19, %s1150_s3 }
 0x4bc   :  { %v700_v20 = vpop.permute.xlu0 %699 }
 0x4bd   :  { %v701_v21 = vadd.f32 %v700_v20, %v698_v17 }
 0x4be   :  { %v712_v22 = vpop.permute.xlu1 %711 }
 0x4bf   :  { %v713_v23 = vadd.f32 %v712_v22, %v710_v19  ;;  %702 = vrot.lane.b32.xlu2 %v701_v21, %s1142_s26 }
 0x4c1   :  { %714 = vrot.lane.b32.xlu0 %v713_v23, %s1142_s26 }
 0x519   :  { %v703_v24 = vpop.permute.xlu2 %702 }
 0x51a   :  { %v704_v25 = vadd.f32 %v703_v24, %v701_v21 }
 0x51c   :  { %v717_v26 = vmul.f32 0.001953125, %v704_v25 }
 0x51e   :  { %v719_v29 = vmul.f32 %v717_v26, %v717_v26 }
 0x533   :  { %v715_v27 = vpop.permute.xlu0 %714 }
 0x534   :  { %v716_v28 = vadd.f32 %v715_v27, %v713_v23 }
 0x536   :  { %v718_v33 = vmul.f32 0.001953125, %v716_v28 }
 0x538   :  { %v720_v34 = vsub.f32 %v718_v33, %v719_v29 }
 0x53a   :  { %v721_v35 = vmax.f32 %v720_v34, 0.0 }
 0x53c   :  { %v722_v36 = vadd.f32 1e-05, %v721_v35 }
 0x53e   :  { %1011 = vrsqrt.f32 %v722_v36  ;;  %vm729_vm0 = vweird.f32 %v722_v36 }
 0x544   :  { %v1012_v37 = vpop.eup %1011 }
 0x545   :  { %v724_v38 = vmul.f32 %v1012_v37, %v722_v36  ;;  %vm730_vm15 = vweird.f32 %v1012_v37 }
 0x546   :  { %vm731_vm1 = vmor %vm729_vm0, %vm730_vm15 }
 0x547   :  { %v725_v39 = vmul.f32 %v1012_v37, %v724_v38 }
 0x549   :  { %v726_v40 = vmul.f32 0.5, %v725_v39 }
 0x54b   :  { %v727_v42 = vsub.f32 1.5, %v726_v40 }
 0x54d   :  { %v728_v44 = vmul.f32 %v1012_v37, %v727_v42 }
 0x54f   :  { %v732_v45 = vsel %vm731_vm1, %v1012_v37, %v728_v44 }
 0x550   :  { %v733_v46 = vmul.f32 %v732_v45, %v669_v43 }
 0x552   :  { %v734_v48 = vmul.f32 %v733_v46, %v717_v26  ;;  %v736_v49 = vperm.slane %v733_v46, 0 }
 0x554   :  { %v735_v53 = vsub.f32 %v670_v47, %v734_v48  ;;  %v737_v54 = vmul.f32 %v736_v49, %v1256_v51  ;;  %v738_v56 = vmul.f32 %v736_v49, %v1254_v50  ;;  %v739_v57 = vmul.f32 %v736_v49, %v1258_v52 }
 0x555   :  { %v740_v58 = vmul.f32 %v736_v49, %v1269_v63 }
 0x556   :  { %v741_v55 = vperm.slane %v735_v53, 0 }
 0x558   :  { %v742_v59 = vadd.f32 %v741_v55, %v737_v54  ;;  %v743_v60 = vadd.f32 %v741_v55, %v738_v56  ;;  %v744_v61 = vadd.f32 %v741_v55, %v739_v57  ;;  %v745_v62 = vadd.f32 %v741_v55, %v740_v58 }
 0x55a   :  { %v746_v0 = vmax.f32 %v742_v59, 0.0  ;;  %v747_v1 = vmax.f32 %v743_v60, 0.0  ;;  %v748_v2 = vmax.f32 %v744_v61, 0.0  ;;  %v749_v51 = vmax.f32 %v745_v62, 0.0 }
 0x55c   :  { %750 = vst [vmem:[#allocation10] sm:$0xff] %v746_v0 }
 0x55d   :  { %751 = vst [vmem:[#allocation10 + $0x8] sm:$0xff] %v747_v1 }
 0x55e   :  { %752 = vst [vmem:[#allocation10 + $0x10] sm:$0xff] %v748_v2 }
 0x55f   :  { %753 = vst [vmem:[#allocation10 + $0x18] sm:$0xff] %v749_v51 }
 0x560   :  { %766 = dma.vmem_to_hbm [thread:$0]  %s759_s19, 512, %s761_s22, [#allocation4], %s1145_s30, %s1145_s30, %s1146_s1  }
 0x561   :  { %1139 = dma.done.wait [#allocation4], 512  }
 0x562   :  { %1140 = vsyncadd [#allocation4], 4294966784 }
 0x563   :  { %771 = vsyncpa [#allocation3], 1 }
 0x564   :  { %772 = vsyncpa [#allocation6], 1 }
 0x565   :  { %773 = vsyncpa [#allocation9], 1 }
 0x566   :  { %774 = vsyncpa [#allocation4], 1 }

</bundles_post_ra>
